<compile_context>
chip_gen: v7x
topology: tpu7x:2x2x1
jax: 0.10.0
libtpu: 0.0.40
codegen_flags: <defaults>
</compile_context>

<pallas_src>
import jax
import jax.numpy as jnp
from jax import lax
from jax.experimental import pallas as pl
from jax.experimental.pallas import tpu as pltpu

_LANE = 128
_SUBLANE = 8


def _round_up(x, m):
    return (x + m - 1) // m * m


# ---------------------------------------------------------------------------
# Kernels
# ---------------------------------------------------------------------------
def _wr_linear_kernel(x_ref, w_ref, b_ref, o_ref):
    """Weight-resident path: whole W (out_p, in_dim) stays in VMEM across the
    batch grid; one MXU pass per batch tile, bias add fused into the store."""
    y = lax.dot_general(
        x_ref[...], w_ref[...],
        dimension_numbers=(((1,), (1,)), ((), ())),   # y = x @ W.T, no W.T copy
        preferred_element_type=jnp.float32,
    )
    o_ref[...] = (y + b_ref[...]).astype(o_ref.dtype)


def _kt_linear_kernel(x_ref, w_ref, b_ref, o_ref):
    """K-tiled fallback for weights too large to keep resident.  The (f32)
    output block index is constant across k, so accumulate directly into it."""
    k = pl.program_id(2)

    @pl.when(k == 0)
    def _():
        o_ref[...] = jnp.zeros_like(o_ref)

    o_ref[...] += lax.dot_general(
        x_ref[...], w_ref[...],
        dimension_numbers=(((1,), (1,)), ((), ())),
        preferred_element_type=jnp.float32,
    )

    @pl.when(k == pl.num_programs(2) - 1)
    def _():
        o_ref[...] += b_ref[...]   # fused bias on the finalize step


# ---------------------------------------------------------------------------
# Wrappers
# ---------------------------------------------------------------------------
def _forward_weight_resident(x, W, b_row, batch, in_dim, out_p, out_dtype):
    itemsize = jnp.dtype(x.dtype).itemsize
    # Batch tile: multiple of 8 (sublane), capped so streamed x/out tiles stay
    # small enough to double-buffer comfortably even on v7x (64 MiB VMEM).
    if batch <= _SUBLANE:
        tm = batch
    else:
        row_bytes = (in_dim + out_p) * max(itemsize, 4)
        cap = max(_SUBLANE, ((8 << 20) // row_bytes) // _SUBLANE * _SUBLANE)
        tm = max(_SUBLANE, (min(256, batch, cap) // _SUBLANE) * _SUBLANE)

    grid = (pl.cdiv(batch, tm),)

    req = 2 * (tm * in_dim * itemsize          # streamed x tiles
               + out_p * in_dim * itemsize     # resident weight
               + out_p * 4                     # bias row
               + tm * out_p * 4)               # output tiles
    vmem_limit = int(min(max(req + (4 << 20), 32 << 20), 56 << 20))

    cost = pl.CostEstimate(
        flops=2 * batch * in_dim * out_p,
        transcendentals=0,
        bytes_accessed=int(x.nbytes + W.nbytes
                           + batch * out_p * jnp.dtype(out_dtype).itemsize),
    )

    return pl.pallas_call(
        _wr_linear_kernel,
        out_shape=jax.ShapeDtypeStruct((batch, out_p), out_dtype),
        grid_spec=pltpu.PrefetchScalarGridSpec(
            num_scalar_prefetch=0,
            grid=grid,
            in_specs=[
                pl.BlockSpec((tm, in_dim), lambda i: (i, 0)),     # stream x
                pl.BlockSpec((out_p, in_dim), lambda i: (0, 0)),  # W resident
                pl.BlockSpec((1, out_p), lambda i: (0, 0)),       # bias resident
            ],
            out_specs=pl.BlockSpec((tm, out_p), lambda i: (i, 0)),
        ),
        compiler_params=pltpu.CompilerParams(
            dimension_semantics=("parallel",),
            vmem_limit_bytes=vmem_limit,
        ),
        cost_estimate=cost,
    )(x, W, b_row)


def _forward_k_tiled(x, W, b_row, batch, in_dim, out_p, out_dtype):
    tk = 512
    tn = min(out_p, 512)
    if batch <= _SUBLANE:
        tm = batch
    else:
        tm = max(_SUBLANE, (min(256, batch) // _SUBLANE) * _SUBLANE)

    # K is a reduction axis: zero-pad it to a multiple of tk so edge-block
    # garbage is never accumulated.  (For a static W this pad belongs in init.)
    in_p = _round_up(in_dim, tk)
    if in_p != in_dim:
        x = jnp.pad(x, ((0, 0), (0, in_p - in_dim)))
        W = jnp.pad(W, ((0, 0), (0, in_p - in_dim)))

    grid = (pl.cdiv(batch, tm), pl.cdiv(out_p, tn), in_p // tk)

    cost = pl.CostEstimate(
        flops=2 * batch * in_p * out_p,
        transcendentals=0,
        bytes_accessed=int(x.nbytes + W.nbytes + batch * out_p * 4),
    )

    y = pl.pallas_call(
        _kt_linear_kernel,
        out_shape=jax.ShapeDtypeStruct((batch, out_p), jnp.float32),
        grid_spec=pltpu.PrefetchScalarGridSpec(
            num_scalar_prefetch=0,
            grid=grid,
            in_specs=[
                pl.BlockSpec((tm, tk), lambda i, j, k: (i, k)),
                pl.BlockSpec((tn, tk), lambda i, j, k: (j, k)),  # W kept (out,in)
                pl.BlockSpec((1, tn), lambda i, j, k: (0, j)),   # fused bias
            ],
            out_specs=pl.BlockSpec((tm, tn), lambda i, j, k: (i, j)),
        ),
        compiler_params=pltpu.CompilerParams(
            dimension_semantics=("parallel", "parallel", "arbitrary"),
            vmem_limit_bytes=int(32 << 20),
        ),
        cost_estimate=cost,
    )(x, W, b_row)
    return y.astype(out_dtype)


def linear_readout_forward(x, W, b=None, *, compute_dtype=None,
                           vmem_weight_budget=12 << 20):
    """Pallas equivalent of LinearReadout.forward: y = x @ W.T (+ b).

    x: (batch, in_dim); W: (out_dim, in_dim) (PyTorch nn.Linear layout);
    b: optional (out_dim,).  compute_dtype=jnp.bfloat16 casts inputs at the
    kernel boundary while keeping f32 accumulation (v6e/v7x peak MXU path).
    """
    batch, in_dim = x.shape
    out_dim, in_dim_w = W.shape
    assert in_dim_w == in_dim, "W must be (out_dim, in_dim)"
    out_dtype = x.dtype

    if compute_dtype is not None:
        x = x.astype(compute_dtype)
        W = W.astype(compute_dtype)

    # Lane-dense output: pad out_dim up to a multiple of 128 so output stores
    # are full-lane (unmasked) vst's.  For a static parameter, fold this pad
    # into parameter init so it is not paid per call.
    out_p = _round_up(out_dim, _LANE)
    if out_p != out_dim:
        W = jnp.pad(W, ((0, out_p - out_dim), (0, 0)))
        if b is not None:
            b = jnp.pad(b, (0, out_p - out_dim))
    # Bias is fused into the matmul kernel; a zero row when absent (tiny, free).
    b_row = (jnp.zeros((1, out_p), jnp.float32) if b is None
             else b.astype(jnp.float32).reshape(1, out_p))

    weight_bytes = out_p * in_dim * jnp.dtype(W.dtype).itemsize
    if weight_bytes <= vmem_weight_budget:
        y = _forward_weight_resident(x, W, b_row, batch, in_dim, out_p, out_dtype)
    else:
        y = _forward_k_tiled(x, W, b_row, batch, in_dim, out_p, out_dtype)

    return y if out_p == out_dim else y[:, :out_dim]


def init_linear_readout_params(key, in_dim, out_dim, bias=False):
    """Deterministic init matching torch.nn.Linear: U(-1/sqrt(in_dim), 1/sqrt(in_dim))."""
    bound = 1.0 / jnp.sqrt(jnp.float32(in_dim))
    kw, kb = jax.random.split(key)
    W = jax.random.uniform(kw, (out_dim, in_dim), jnp.float32, -bound, bound)
    b = (jax.random.uniform(kb, (out_dim,), jnp.float32, -bound, bound)
         if bias else None)
    return W, b


# TODO(synk): train_step (hebbian_wta / cross-entropy update) is a training-time
# side effect, not part of forward(); not implemented as a kernel.


if __name__ == "__main__":
    key = jax.random.PRNGKey(0)
    k_x, k_p = jax.random.split(key)

    batch, in_dim, out_dim = 8, 32, 16
    x = jax.random.normal(k_x, (batch, in_dim), jnp.float32)
    W, b = init_linear_readout_params(k_p, in_dim, out_dim, bias=True)

    y_ref = x @ W.T

    # Default module config (bias=False) — weight-resident fast path.
    y = linear_readout_forward(x, W, None)
    jax.block_until_ready(y)
    assert y.shape == (batch, out_dim)
    assert jnp.allclose(y, y_ref, atol=1e-5, rtol=1e-5)

    # bias=True — bias fused inside the matmul kernel.
    yb = linear_readout_forward(x, W, b)
    jax.block_until_ready(yb)
    assert jnp.allclose(yb, y_ref + b, atol=1e-5, rtol=1e-5)

    # Force the K-tiled fallback path (as if the weight were too big for VMEM).
    yk = linear_readout_forward(x, W, b, vmem_weight_budget=0)
    jax.block_until_ready(yk)
    assert jnp.allclose(yk, y_ref + b, atol=1e-5, rtol=1e-5)

    print("KERNEL_OK")
</pallas_src>

<mosaic_0001>
module attributes {stable_mosaic.version = 11 : i64} {
  func.func @_wr_linear_kernel(%arg0: i32, %arg1: memref<8x32xf32, #tpu.memory_space<vmem>>, %arg2: memref<128x32xf32, #tpu.memory_space<vmem>>, %arg3: memref<1x128xf32, #tpu.memory_space<vmem>>, %arg4: memref<8x128xf32, #tpu.memory_space<vmem>>) attributes {dimension_semantics = [#tpu.dimension_semantics<parallel>], iteration_bounds = array<i64: 1>, scalar_prefetch = 0 : i64, scratch_operands = 0 : i64, tpu.core_type = #tpu.core_type<tc>, window_params = [{transform_indices = @transform_0, window_bounds = array<i64: 8, 32>}, {pipeline_mode = #tpu.pipeline_mode<synchronous>, transform_indices = @transform_1, window_bounds = array<i64: 128, 32>}, {pipeline_mode = #tpu.pipeline_mode<synchronous>, transform_indices = @transform_2, window_bounds = array<i64: 1, 128>}, {transform_indices = @transform_3, window_bounds = array<i64: 8, 128>}]} {
    %c0 = arith.constant 0 : index
    %c0_0 = arith.constant 0 : index
    %0 = vector.load %arg1[%c0, %c0_0] : memref<8x32xf32, #tpu.memory_space<vmem>>, vector<8x32xf32>
    %c0_1 = arith.constant 0 : index
    %c0_2 = arith.constant 0 : index
    %1 = vector.load %arg2[%c0_1, %c0_2] : memref<128x32xf32, #tpu.memory_space<vmem>>, vector<128x32xf32>
    %cst = arith.constant dense<0.000000e+00> : vector<8x128xf32>
    %2 = tpu.matmul %0, %1, %cst {dimension_numbers = #tpu.dot_dimension_numbers<[1], [1], [0], [0], [0, 0, 1, 0], [], []>} : vector<8x32xf32>, vector<128x32xf32>, vector<8x128xf32> -> vector<8x128xf32>
    %c0_3 = arith.constant 0 : index
    %c0_4 = arith.constant 0 : index
    %3 = vector.load %arg3[%c0_3, %c0_4] : memref<1x128xf32, #tpu.memory_space<vmem>>, vector<1x128xf32>
    %4 = vector.broadcast %3 : vector<1x128xf32> to vector<8x128xf32>
    %5 = arith.addf %2, %4 : vector<8x128xf32>
    %c0_5 = arith.constant 0 : index
    %c0_6 = arith.constant 0 : index
    %6 = vector.load %arg4[%c0_5, %c0_6] : memref<8x128xf32, #tpu.memory_space<vmem>>, vector<8x128xf32>
    tpu.vector_store %arg4[%c0_5, %c0_6], %5 {strides = array<i32>} : memref<8x128xf32, #tpu.memory_space<vmem>>, vector<8x128xf32>,
    return
  }
  func.func @transform_0(%arg0: i32) -> (i32, i32) {
    %c0_i32 = arith.constant 0 : i32
    %c0_i32_0 = arith.constant 0 : i32
    return %arg0, %c0_i32 : i32, i32
  }
  func.func @transform_1(%arg0: i32) -> (i32, i32) {
    %c0_i32 = arith.constant 0 : i32
    %c0_i32_0 = arith.constant 0 : i32
    %c0_i32_1 = arith.constant 0 : i32
    return %c0_i32, %c0_i32_0 : i32, i32
  }
  func.func @transform_2(%arg0: i32) -> (i32, i32) {
    %c0_i32 = arith.constant 0 : i32
    %c0_i32_0 = arith.constant 0 : i32
    %c0_i32_1 = arith.constant 0 : i32
    return %c0_i32, %c0_i32_0 : i32, i32
  }
  func.func @transform_3(%arg0: i32) -> (i32, i32) {
    %c0_i32 = arith.constant 0 : i32
    %c0_i32_0 = arith.constant 0 : i32
    return %arg0, %c0_i32 : i32, i32
  }
}

</mosaic_0001>

<bundles_post_ra>
// kernel: tpu_custom_call.1
= control target key start
LH: loop header
LB: loop body
LE: loop exit
PB: predicated region body
PF: predicated region fallthrough
CT: control target
= control target key end

     0   :  { %vm39_vm0 = vcmask 261120   ;;  %v306_v2 = vmov 0.0|0.0   ;;  %vm307_vm2 = vmmov 0   ;;  %v308_v5 = vmov 0.0   ;;  %s419_s0 = inlined_call_operand.vmem [shape: f32[8,32], index: 0, kind: input, shape index: {}]   ;;  %s420_s1 = inlined_call_operand.vmem [shape: f32[128,32], index: 1, kind: input, shape index: {}]   ;;  %s421_s2 = inlined_call_operand.vmem [shape: f32[1,128], index: 2, kind: input, shape index: {}]   ;;  %s422_s3 = inlined_call_operand.hbm [shape: f32[8,128], index: 3, kind: output, shape index: {}]  }
   0x1   :  { %v16_v0 = vld [vmem:[%s420_s1] sm:$0xff]  ;;  %v17_v1 = vld [vmem:[%s420_s1 + $0x8] sm:$0xff]  ;;  %246 = vmatprep.subr.bf16.mxu0 %v306_v2  ;;  %vm338_vm1 = vmpackc.low %vm39_vm0, %vm39_vm0  ;;  %243 = vmatprep.mubr.msk.f32.mxu0 %vm307_vm2, %v308_v5 }
   0x2   :  { %v247_v3 = vpack.c.bf16 %v17_v1, %v16_v0  ;;  %v18_v6 = vld [vmem:[%s420_s1 + $0x10] sm:$0xff]  ;;  %v19_v7 = vld [vmem:[%s420_s1 + $0x18] sm:$0xff] }
   0x4   :  { %249 = vmatpush3.bf16.xpose.msk.msra.mxu0 %vm338_vm1, %v247_v3 }
   0x5   :  { %250 = vmatprep.subr.bf16.mxu0 %v306_v2 }
   0x6   :  { %8 = vsyncpa [#allocation3], 0  ;;  %v251_v8 = vpack.c.bf16 %v19_v7, %v18_v6  ;;  %v20_v9 = vld [vmem:[%s420_s1 + $0x20] sm:$0xff]  ;;  %v21_v10 = vld [vmem:[%s420_s1 + $0x28] sm:$0xff]  ;;  %s309_s21 = smov [#allocation2]  }
   0x7   :  { %v255_v11 = vpack.c.bf16 %v21_v10, %v20_v9  ;;  %v22_v12 = vld [vmem:[%s420_s1 + $0x30] sm:$0xff]  ;;  %v23_v13 = vld [vmem:[%s420_s1 + $0x38] sm:$0xff]  ;;  %v24_v15 = vld [vmem:[%s420_s1 + $0x40] sm:$0xff]  ;;  %s168_s22 = sshll.u32 %s309_s21, 4  ;;  %s169_s22 = int_to_ptr.vmem [resolvable:$true] %s168_s22 }
   0x8   :  { %v259_v14 = vpack.c.bf16 %v23_v13, %v22_v12  ;;  %v25_v16 = vld [vmem:[%s420_s1 + $0x48] sm:$0xff]  ;;  %v26_v18 = vld [vmem:[%s420_s1 + $0x50] sm:$0xff]  ;;  %v27_v19 = vld [vmem:[%s420_s1 + $0x58] sm:$0xff]  ;;  %p287_p1 = scmp.lt.s32.totalorder %s169_s22, %s169_s22 }
   0x9   :  { %v263_v17 = vpack.c.bf16 %v25_v16, %v24_v15  ;;  %v267_v20 = vpack.c.bf16 %v27_v19, %v26_v18  ;;  %v28_v21 = vld [vmem:[%s420_s1 + $0x60] sm:$0xff]  ;;  %v29_v22 = vld [vmem:[%s420_s1 + $0x68] sm:$0xff]  ;;  %v30_v24 = vld [vmem:[%s420_s1 + $0x70] sm:$0xff] }
   0xa   :  { %v271_v23 = vpack.c.bf16 %v29_v22, %v28_v21  ;;  %v31_v25 = vld [vmem:[%s420_s1 + $0x78] sm:$0xff]  ;;  %v15_v27 = vld [vmem:[%s419_s0] sm:$0xff]  ;;  %s282_s1 = scalar_lea.vmem %s169_s22, 128 }
   0xb   :  { %v275_v26 = vpack.c.bf16 %v31_v25, %v30_v24  ;;  %v176_v28 = vld [vmem:[%s421_s2] ss:$0 sm:$0xff]  ;;  %p283_p0 = scmp.ne.s32.totalorder %s169_s22, %s282_s1  ;;  %p288_p2 = scmp.lt.s32.totalorder %s282_s1, %s282_s1 }
   0xc   :  { %253 = vmatpush3.bf16.xpose.msk.msra.mxu0 %vm338_vm1, %v251_v8 }
   0xd   :  { %254 = vmatprep.subr.bf16.mxu0 %v306_v2  ;;  %p289_p3 = por %p288_p2, %p287_p1 }
   0xf   :  { %p290_p4 = pnand %p289_p3, %p283_p0 }
  0x14   :  { %257 = vmatpush3.bf16.xpose.msk.msra.mxu0 %vm338_vm1, %v255_v11 }
  0x15   :  { %258 = vmatprep.subr.bf16.mxu0 %v306_v2 }
  0x1c   :  { %261 = vmatpush3.bf16.xpose.msk.msra.mxu0 %vm338_vm1, %v259_v14 }
  0x1d   :  { %262 = vmatprep.subr.bf16.mxu0 %v306_v2 }
  0x24   :  { %265 = vmatpush3.bf16.xpose.msk.msra.mxu0 %vm338_vm1, %v263_v17 }
  0x25   :  { %266 = vmatprep.subr.bf16.mxu0 %v306_v2 }
  0x2c   :  { %269 = vmatpush3.bf16.xpose.msk.msra.mxu0 %vm338_vm1, %v267_v20 }
  0x2d   :  { %270 = vmatprep.subr.bf16.mxu0 %v306_v2 }
  0x34   :  { %273 = vmatpush3.bf16.xpose.msk.msra.mxu0 %vm338_vm1, %v271_v23 }
  0x35   :  { %274 = vmatprep.subr.bf16.mxu0 %v306_v2 }
  0x3c   :  { %277 = vmatpush3.bf16.xpose.msk.msra.mxu0 %vm338_vm1, %v275_v26 }
  0x43   :  { %244 = vmatmul.mubr.msk.f32.vlgmr.msra.gmra.mrb[0].mxu0 %vm39_vm0, %v15_v27 }
 0x116   :  { %v157_v29 = vpop.f32.mrb[0].mxu0 }
 0x117   :  { %v158_v30 = vadd.f32 %v176_v28, %v157_v29  ;;  %v245_v31 = vpop.f32.mrb[1].mxu0 }
 0x119   :  { %161 = vst [vmem:[#allocation2] sm:$0xff] %v158_v30 }
 0x11a   :  { %293 = shalt.err (!%p290_p4)
}
 0x11b   :  { %s294_s24 = scalar_lea.hbm %s422_s3, 128 }
 0x11c   :  { %p295_p5 = scmp.ne.s32.totalorder %s422_s3, %s294_s24  ;;  %p298_p6 = scmp.lt.u32.totalorder %s294_s24, %s422_s3 }
 0x11e   :  { %p300_p7 = pnand %p298_p6, %p295_p5 }
 0x120   :  { %303 = shalt.err (!%p300_p7)
}
 0x121   :  { %171 = dma.vmem_to_hbm [thread:$0]  %s169_s22, 128, %s422_s3, [#allocation3]  }
 0x122   :  { %304 = dma.done.wait [#allocation3], 128  }
 0x123   :  { %305 = vsyncadd [#allocation3], 4294967168 }
 0x124   :  { %175 = vsyncpa [#allocation3], 1 }

</bundles_post_ra>
